<compile_context>
chip_gen: v6e
topology: v6e:2x2x1
jax: 0.10.0
libtpu: 0.0.40
codegen_flags: <defaults>
</compile_context>

<pallas_src>
import functools

import jax
import jax.numpy as jnp
from jax import lax
from jax.experimental import pallas as pl
from jax.experimental.pallas import tpu as pltpu


def _layernorm_kernel(x_ref, g_ref, o_ref, *, eps, inv_c):
    # x_ref: (1, C, TH) input dtype; g_ref: (1, C, 1) f32; o_ref: (1, C, TH)
    x = x_ref[...].astype(jnp.float32)
    g = g_ref[...]  # already float32

    # One-pass statistics over the channel axis.
    s1 = jnp.sum(x, axis=1, keepdims=True)          # (1, 1, TH)
    s2 = jnp.sum(x * x, axis=1, keepdims=True)      # (1, 1, TH)
    mean = s1 * inv_c
    var = jnp.maximum(s2 * inv_c - mean * mean, 0.0)  # unbiased=False, clamped
    inv = lax.rsqrt(var + eps)

    o_ref[...] = ((x - mean) * inv * g).astype(o_ref.dtype)


def _choose_tile_hw(c, hw):
    """Pick a lane-tile TH (multiple of 128) for the HW axis."""
    # Keep c * TH f32 elements around ~1.75 MiB so that double-buffered
    # input + output blocks + f32 temporaries fit the 16 MiB v5e scoped
    # default (and leave plenty of headroom on v6e/v7x).
    budget_elems = 448 * 1024
    cap = max(128, min(2048, (budget_elems // max(c, 1)) // 128 * 128))
    hw_128 = pl.cdiv(hw, 128) * 128
    if hw_128 <= cap:
        return hw_128          # single tile covering (padded) HW
    return cap


def layer_norm(x, g):
    """Channel LayerNorm matching the PyTorch module.

    x: (N, C, H, W); g: (1, C, 1, 1). Returns (N, C, H, W) in x.dtype.
    """
    n, c, h, w = x.shape
    hw = h * w
    eps = 1e-05 if x.dtype == jnp.float32 else 1e-03

    x2 = x.reshape(n, c, hw)
    g2 = g.reshape(1, c, 1).astype(jnp.float32)  # keep gamma in f32

    th = _choose_tile_hw(c, hw)
    hw_p = pl.cdiv(hw, th) * th
    if hw_p != hw:
        # Zero-pad the lane axis: padded columns are independent (reduction is
        # over C) and produce zeros, sliced off below.  Keeps stores lane-dense.
        x2 = jnp.pad(x2, ((0, 0), (0, 0), (0, hw_p - hw)))

    kernel = functools.partial(_layernorm_kernel, eps=eps, inv_c=1.0 / c)

    out = pl.pallas_call(
        kernel,
        out_shape=jax.ShapeDtypeStruct((n, c, hw_p), x.dtype),
        grid_spec=pltpu.PrefetchScalarGridSpec(
            num_scalar_prefetch=0,
            grid=(n, hw_p // th),
            in_specs=[
                pl.BlockSpec((1, c, th), lambda i, j: (i, 0, j)),
                pl.BlockSpec((1, c, 1), lambda i, j: (0, 0, 0)),
            ],
            out_specs=pl.BlockSpec((1, c, th), lambda i, j: (i, 0, j)),
        ),
        compiler_params=pltpu.CompilerParams(
            dimension_semantics=("parallel", "parallel"),
        ),
    )(x2, g2)

    if hw_p != hw:
        out = out[:, :, :hw]
    return out.reshape(n, c, h, w)


def layer_norm_ref(x, g):
    eps = 1e-05 if x.dtype == jnp.float32 else 1e-03
    xf = x.astype(jnp.float32)
    mean = jnp.mean(xf, axis=1, keepdims=True)
    var = jnp.mean((xf - mean) ** 2, axis=1, keepdims=True)
    return ((xf - mean) * lax.rsqrt(var + eps) * g.astype(jnp.float32)).astype(x.dtype)


if __name__ == "__main__":
    key = jax.random.PRNGKey(0)
    N, C, H, W = 2, 4, 16, 16

    x = jax.random.normal(key, (N, C, H, W), dtype=jnp.float32)
    # nn.Parameter(torch.ones(1, dim, 1, 1)) -> deterministic ones init.
    g = jnp.ones((1, C, 1, 1), dtype=jnp.float32)

    out = layer_norm(x, g)
    out = jax.block_until_ready(out)

    ref = layer_norm_ref(x, g)
    assert out.shape == (N, C, H, W)
    assert out.dtype == x.dtype
    assert jnp.allclose(out, ref, atol=1e-5, rtol=1e-5), "mismatch vs reference"

    print("KERNEL_OK")
</pallas_src>

<mosaic_0001>
module attributes {stable_mosaic.version = 11 : i64} {
  func.func @_layernorm_kernel(%arg0: i32, %arg1: i32, %arg2: memref<1x4x256xf32, #tpu.memory_space<vmem>>, %arg3: memref<1x4x1xf32, #tpu.memory_space<vmem>>, %arg4: memref<1x4x256xf32, #tpu.memory_space<vmem>>) attributes {dimension_semantics = [#tpu.dimension_semantics<parallel>, #tpu.dimension_semantics<parallel>], iteration_bounds = array<i64: 2, 1>, scalar_prefetch = 0 : i64, scratch_operands = 0 : i64, tpu.core_type = #tpu.core_type<tc>, window_params = [{transform_indices = @transform_0, window_bounds = array<i64: 1, 4, 256>}, {pipeline_mode = #tpu.pipeline_mode<synchronous>, transform_indices = @transform_1, window_bounds = array<i64: 1, 4, 1>}, {transform_indices = @transform_2, window_bounds = array<i64: 1, 4, 256>}]} {
    %c0 = arith.constant 0 : index
    %c0_0 = arith.constant 0 : index
    %c0_1 = arith.constant 0 : index
    %0 = vector.load %arg2[%c0, %c0_0, %c0_1] : memref<1x4x256xf32, #tpu.memory_space<vmem>>, vector<1x4x256xf32>
    %c0_2 = arith.constant 0 : index
    %c0_3 = arith.constant 0 : index
    %c0_4 = arith.constant 0 : index
    %1 = vector.load %arg3[%c0_2, %c0_3, %c0_4] : memref<1x4x1xf32, #tpu.memory_space<vmem>>, vector<1x4x1xf32>
    %cst = arith.constant dense<0.000000e+00> : vector<1x256xf32>
    %2 = vector.multi_reduction <add>, %0, %cst [1] : vector<1x4x256xf32> to vector<1x256xf32>
    %3 = vector.shape_cast %2 : vector<1x256xf32> to vector<1x1x256xf32>
    %4 = arith.mulf %0, %0 : vector<1x4x256xf32>
    %cst_5 = arith.constant dense<0.000000e+00> : vector<1x256xf32>
    %5 = vector.multi_reduction <add>, %4, %cst_5 [1] : vector<1x4x256xf32> to vector<1x256xf32>
    %6 = vector.shape_cast %5 : vector<1x256xf32> to vector<1x1x256xf32>
    %cst_6 = arith.constant 2.500000e-01 : f32
    %7 = vector.broadcast %cst_6 : f32 to vector<1x1x256xf32>
    %8 = arith.mulf %3, %7 : vector<1x1x256xf32>
    %cst_7 = arith.constant 2.500000e-01 : f32
    %9 = vector.broadcast %cst_7 : f32 to vector<1x1x256xf32>
    %10 = arith.mulf %6, %9 : vector<1x1x256xf32>
    %11 = arith.mulf %8, %8 : vector<1x1x256xf32>
    %12 = arith.subf %10, %11 : vector<1x1x256xf32>
    %cst_8 = arith.constant 0.000000e+00 : f32
    %13 = vector.broadcast %cst_8 : f32 to vector<1x1x256xf32>
    %14 = arith.maximumf %12, %13 : vector<1x1x256xf32>
    %cst_9 = arith.constant 9.99999974E-6 : f32
    %15 = vector.broadcast %cst_9 : f32 to vector<1x1x256xf32>
    %16 = arith.addf %14, %15 : vector<1x1x256xf32>
    %17 = math.rsqrt %16 : vector<1x1x256xf32>
    %18 = vector.broadcast %8 : vector<1x1x256xf32> to vector<1x4x256xf32>
    %19 = arith.subf %0, %18 : vector<1x4x256xf32>
    %20 = vector.broadcast %17 : vector<1x1x256xf32> to vector<1x4x256xf32>
    %21 = arith.mulf %19, %20 : vector<1x4x256xf32>
    %22 = vector.broadcast %1 : vector<1x4x1xf32> to vector<1x4x256xf32>
    %23 = arith.mulf %21, %22 : vector<1x4x256xf32>
    %c0_10 = arith.constant 0 : index
    %c0_11 = arith.constant 0 : index
    %c0_12 = arith.constant 0 : index
    %24 = vector.load %arg4[%c0_10, %c0_11, %c0_12] : memref<1x4x256xf32, #tpu.memory_space<vmem>>, vector<1x4x256xf32>
    tpu.vector_store %arg4[%c0_10, %c0_11, %c0_12], %23 {strides = array<i32>} : memref<1x4x256xf32, #tpu.memory_space<vmem>>, vector<1x4x256xf32>,
    return
  }
  func.func @transform_0(%arg0: i32, %arg1: i32) -> (i32, i32, i32) {
    %c0_i32 = arith.constant 0 : i32
    %c0_i32_0 = arith.constant 0 : i32
    return %arg0, %c0_i32, %arg1 : i32, i32, i32
  }
  func.func @transform_1(%arg0: i32, %arg1: i32) -> (i32, i32, i32) {
    %c0_i32 = arith.constant 0 : i32
    %c0_i32_0 = arith.constant 0 : i32
    %c0_i32_1 = arith.constant 0 : i32
    %c0_i32_2 = arith.constant 0 : i32
    return %c0_i32, %c0_i32_0, %c0_i32_1 : i32, i32, i32
  }
  func.func @transform_2(%arg0: i32, %arg1: i32) -> (i32, i32, i32) {
    %c0_i32 = arith.constant 0 : i32
    %c0_i32_0 = arith.constant 0 : i32
    return %arg0, %c0_i32, %arg1 : i32, i32, i32
  }
}

</mosaic_0001>

<bundles_post_ra>
// kernel: tpu_custom_call.1
= control target key start
LH: loop header
LB: loop body
LE: loop exit
PB: predicated region body
PF: predicated region fallthrough
CT: control target
= control target key end

     0   :  { %7 = vsyncpa [#allocation3], 0  ;;  %s714_s0 = inlined_call_operand.hbm [shape: f32[2,4,256], index: 0, kind: input, shape index: {}]   ;;  %s715_s1 = inlined_call_operand.vmem [shape: f32[1,4,1], index: 1, kind: input, shape index: {}]   ;;  %s716_s2 = inlined_call_operand.hbm [shape: f32[2,4,256], index: 2, kind: output, shape index: {}]  }
   0x1   :  { %9 = vsyncpa [#allocation3 + $0x1], 0 }
   0x2   :  { %10 = vsyncpa [#allocation4], 0 }
   0x3   :  { %12 = vsyncpa [#allocation4 + $0x1], 0  ;;  %s573_s9 = smov 0   ;;  %s575_s10 = smov 0  }
   0x4   :  { %s577_s11 = smov 0   ;;  %s579_s12 = smov 0  }
   0x5   :  { %s581_s13 = smov 0   ;;  %s583_s14 = smov 0  }
   0x6 LB: > { %s357_s15 = sadd.s32 4294967295, %s552_s14   ;;  %s358_s16 = sadd.s32 4294967294, %s552_s14   ;;  %s552_s14 = sphi %s583_s14, %s18_s14   ;;  %s548_s13 = sphi %s581_s13, %s728_s13   ;;  %s544_s12 = sphi %s579_s12, %s727_s12   ;;  %s540_s11 = sphi %s577_s11, %s726_s11   ;;  %s536_s10 = sphi %s575_s10, %s725_s10   ;;  %s532_s9 = sphi %s573_s9, %s724_s9  }
   0x7   : > { %s30_s17 = sadd.s32 1, %s548_s13  ;;  %s39_s18 = sadd.s32 1, %s540_s11 }
   0x8   : > { %p32_p0 = scmp.ge.s32.totalorder %s30_s17, 2  ;;  %p46_p1 = scmp.ne.s32.totalorder %s540_s11, %s536_s10 }
   0x9   : > { %p47_p2 = scmp.eq.s32.totalorder %s552_s14, 0  ;;  %p52_p3 = scmp.ne.s32.totalorder %s536_s10, %s532_s9 }
   0xa   : > { %s730_s17 = smov (%p32_p0, %s30_s17), 0  ;;  %p53_p5 = scmp.eq.s32.totalorder %s357_s15, 0 }
   0xb   : > { %p614_p4 = por %p47_p2, %p46_p1  ;;  %s34_s20 = ssub.s32 %s548_s13, %s730_s17 }
   0xc   : > { %p99_p6 = scmp.eq.s32.totalorder %s357_s15, 1  ;;  %p37_p7 = scmp.eq.s32.totalorder %s34_s20, 0 }
   0xd   : > { %p620_p8 = por %p53_p5, %p52_p3  ;;  %p105_p10 = scmp.eq.s32.totalorder %s358_s16, 1 }
   0xe   : > { %p624_p9 = por %p99_p6, %p46_p1  ;;  %p386_p13 = scmp.lt.s32.totalorder %s552_s14, 2 }
   0xf   : > { %s629_s23 = scalar_select %p37_p7, %s540_s11, %s39_s18  }
  0x10   : > { %p631_p11 = por %p105_p10, %p52_p3  ;;  %s128_s25 = sand.u32 1, %s540_s11  }
  0x11   : > { %s361_s26 = sshll.u32 %s128_s25, 3  ;;  %s372_s27 = sshll.u32 %s548_s13, 7 }
  0x12   : > { %s720_s24 = scalar_select %p631_p11, 1, 0 }
  0x13   : > { %s140_s30 = scalar_lea.hbm %s714_s0, %s372_s27  ;;  %s132_s3 = scalar_lea.vmem [#allocation2], %s361_s26 }
  0x14   : > { %s142_s4 = sshll.u32 %s132_s3, 4  ;;  %p644_p0 = pnand %p386_p13, %p614_p4  ;;  %s143_s4 = int_to_ptr.vmem [resolvable:$true] %s142_s4 }
  0x15   : > { %p364_p1 = scmp.ge.s32.totalorder %s552_s14, 1  ;;  %p147_p2 = scmp.lt.s32.totalorder %s552_s14, 3 }
  0x16   : > { %s129_s6 = scalar_lea.sflag [#allocation3], %s128_s25  ;;  %p446_p3 = pneg %p644_p0 }
  0x17   : > { %s457_s7 = scalar_lea.vmem %s143_s4, 128  ;;  %s554_s8 = smov [#allocation2]  }
  0x18   : > { %p458_p5 = scmp.ne.s32.totalorder %s143_s4, %s457_s7  ;;  %s462_s15 = sshll.u32 %s554_s8, 4  ;;  %s463_s15 = int_to_ptr.vmem [resolvable:$false] %s462_s15 }
  0x19   : > { %s464_s16 = scalar_lea.vmem %s463_s15, 256  ;;  %p465_p10 = scmp.lt.s32.totalorder %s143_s4, %s463_s15 }
  0x1a   : > { %p460_p6 = pnand %p458_p5, %p446_p3  ;;  %p466_p12 = scmp.lt.s32.totalorder %s464_s16, %s457_s7 }
  0x1c   : > { %p461_p7 = pneg %p460_p6  ;;  %p467_p4 = por %p466_p12, %p465_p10 }
  0x1e   : > { %p468_p13 = pnand %p467_p4, %p461_p7 }
  0x20   : > { %471 = shalt.err (!%p468_p13)
}
  0x21   : > { %381 = dma.hbm_to_vmem [thread:$0]  (!%p644_p0), %s140_s30, 128, %s143_s4, %s129_s6  }
  0x22   : > { %p148_p11 = pnand %p364_p1, %p147_p2 }
  0x23   : > { %s659_s18 = sand.u32 (!%p148_p11), 1, %s536_s10  }
  0x24   : > { %151 = sbr.rel (%p148_p11) target bundleno = 185 (0xb9), region = 28  ;;  %s365_s19 = sshll.u32 (!%p148_p11), %s659_s18, 3 }
  0x25   : > { %s154_s20 = scalar_lea.sflag (!%p148_p11), [#allocation3], %s659_s18  ;;  %s157_s25 = scalar_lea.vmem (!%p148_p11), [#allocation2], %s365_s19 }
  0x29   : > { %523 = dma.done.wait (%p620_p8), %s154_s20, 128  }
  0x2a   : > { %525 = vsyncadd (%p620_p8), %s154_s20, 4294967168  ;;  %v555_v0 = vmov 0   ;;  %v181_v1 = vld [vmem:[%s715_s1] sm:$0xf]  ;;  %vm185_vm0 = vcmask 1043456   ;;  %v249_v48 = vlaneseq  ;;  %s373_s21 = sshll.u32 %s544_s12, 7 }
  0x2b   : > { %438 = vset.pattern.permute.xlu0 %v555_v0  ;;  %v180_v2 = vld [vmem:[%s157_s25] sm:$0xff]  ;;  %v556_v46 = vmov 839922192   ;;  %s177_s28 = scalar_lea.vmem [#allocation5], %s365_s19  ;;  %s271_s4 = scalar_lea.hbm %s716_s2, %s373_s21 }
  0x2c   : > { %244 = vperm.xlu0 %438, %v181_v1   ;;  %v183_v3 = vcombine.high %v180_v2, %v180_v2  ;;  %v200_v4 = vmul.f32 %v180_v2, %v180_v2  ;;  %v186_v5 = vsel %vm185_vm0, %v180_v2, 0.0  ;;  %v247_v47 = vunpack.c.l.s4 %v556_v46  ;;  %s273_s29 = sshll.u32 %s177_s28, 4  ;;  %s257_s5 = scalar_lea.sflag [#allocation4], %s659_s18  ;;  %s274_s29 = int_to_ptr.vmem [resolvable:$true] %s273_s29 }
  0x2d   : > { %v187_v8 = vrot.slane %v186_v5, 4  ;;  %v250_v53 = vshrl.u32 %v249_v48, 7  ;;  %s472_s6 = scalar_lea.vmem %s274_s29, 128  ;;  %s557_s7 = smov [#allocation5]  }
  0x2e   : > { %v193_v6 = vsel %vm185_vm0, %v183_v3, 0.0  ;;  %v202_v7 = vcombine.high %v200_v4, %v200_v4  ;;  %v204_v10 = vsel %vm185_vm0, %v200_v4, 0.0  ;;  %v248_v52 = vunpack.c.0.s8 %v247_v47  ;;  %p473_p8 = scmp.ne.s32.totalorder %s274_s29, %s472_s6  ;;  %s476_s8 = sshll.u32 %s557_s7, 4  ;;  %s477_s8 = int_to_ptr.vmem [resolvable:$false] %s476_s8 }
  0x2f   : > { %v194_v9 = vrot.slane %v193_v6, 4  ;;  %v188_v12 = vadd.f32 %v187_v8, %v186_v5  ;;  %v205_v13 = vrot.slane %v204_v10, 4  ;;  %s478_s12 = scalar_lea.vmem %s477_s8, 256  ;;  %p479_p0 = scmp.lt.s32.totalorder %s274_s29, %s477_s8 }
  0x30   : > { %v211_v11 = vsel %vm185_vm0, %v202_v7, 0.0  ;;  %v251_v56 = vsub.s32 %v248_v52, %v250_v53  ;;  %p474_p11 = pnand %p473_p8, %p624_p9  ;;  %p480_p1 = scmp.lt.s32.totalorder %s478_s12, %s472_s6 }
  0x31   : > { %v195_v14 = vadd.f32 %v194_v9, %v193_v6  ;;  %v212_v15 = vrot.slane %v211_v11, 4  ;;  %v189_v16 = vrot.slane %v188_v12, 2  ;;  %v206_v17 = vadd.f32 %v205_v13, %v204_v10 }
  0x32   : > { %p475_p12 = pneg %p474_p11  ;;  %p481_p2 = por %p480_p1, %p479_p0 }
  0x33   : > { %v196_v18 = vrot.slane %v195_v14, 2  ;;  %v213_v19 = vadd.f32 %v212_v15, %v211_v11  ;;  %v190_v20 = vadd.f32 %v189_v16, %v188_v12  ;;  %v207_v21 = vrot.slane %v206_v17, 2 }
  0x34   : > { %p482_p3 = pnand %p481_p2, %p475_p12 }
  0x35   : > { %v197_v22 = vadd.f32 %v196_v18, %v195_v14  ;;  %v214_v23 = vrot.slane %v213_v19, 2  ;;  %v191_v24 = vrot.slane %v190_v20, 1  ;;  %v208_v25 = vadd.f32 %v207_v21, %v206_v17 }
  0x37   : > { %v198_v26 = vrot.slane %v197_v22, 1  ;;  %v215_v27 = vadd.f32 %v214_v23, %v213_v19  ;;  %v192_v28 = vadd.f32 %v191_v24, %v190_v20  ;;  %v209_v29 = vrot.slane %v208_v25, 1 }
  0x39   : > { %v199_v30 = vadd.f32 %v198_v26, %v197_v22  ;;  %v216_v31 = vrot.slane %v215_v27, 1  ;;  %v210_v32 = vadd.f32 %v209_v29, %v208_v25  ;;  %v218_v33 = vmul.f32 0.25, %v192_v28 }
  0x3b   : > { %v217_v34 = vadd.f32 %v216_v31, %v215_v27  ;;  %v219_v35 = vmul.f32 0.25, %v199_v30  ;;  %v220_v36 = vmul.f32 0.25, %v210_v32  ;;  %v222_v37 = vmul.f32 %v218_v33, %v218_v33 }
  0x3d   : > { %v221_v38 = vmul.f32 0.25, %v217_v34  ;;  %v223_v39 = vmul.f32 %v219_v35, %v219_v35  ;;  %v224_v40 = vsub.f32 %v220_v36, %v222_v37  ;;  %v234_v50 = vcombine.low %v218_v33, %v219_v35 }
  0x3f   : > { %v225_v41 = vsub.f32 %v221_v38, %v223_v39  ;;  %v226_v42 = vmax.f32 %v224_v40, 0.0  ;;  %v236_v54 = vsub.f32 %v180_v2, %v234_v50 }
  0x41   : > { %v227_v43 = vmax.f32 %v225_v41, 0.0  ;;  %v228_v44 = vadd.f32 1e-05, %v226_v42 }
  0x43   : > { %v229_v45 = vadd.f32 1e-05, %v227_v43  ;;  %440 = vrsqrt.f32 %v228_v44 }
  0x45   : > { %442 = vrsqrt.f32 %v229_v45 }
  0x50   : > { %v441_v49 = vpop.eup %440 }
  0x52   : > { %v443_v51 = vpop.eup %442 }
  0x53   : > { %v239_v55 = vcombine.low %v441_v49, %v443_v51 }
  0x55   : > { %v241_v57 = vmul.f32 %v239_v55, %v236_v54 }
  0xa7   : > { %v245_v58 = vpop.permute.xlu0 %244 }
  0xa8   : > { %v252_v59 = vrot.slane %v245_v58, %v251_v56 }
  0xaa   : > { %v254_v60 = vmul.f32 %v252_v59, %v241_v57 }
  0xac   : > { %255 = vst [vmem:[%s177_s28] sm:$0xff] %v254_v60 }
  0xad   : > { %485 = shalt.err (!%p482_p3)
}
  0xae   : > { %s486_s15 = scalar_lea.hbm %s271_s4, 128  ;;  %s490_s19 = scalar_lea.hbm %s716_s2, 256 }
  0xaf   : > { %p487_p5 = scmp.ne.s32.totalorder %s271_s4, %s486_s15  ;;  %p491_p10 = scmp.lt.s32.totalorder %s271_s4, %s716_s2 }
  0xb0   : > { %p492_p4 = scmp.lt.s32.totalorder %s490_s19, %s486_s15 }
  0xb1   : > { %p488_p6 = pnand %p487_p5, %p624_p9 }
  0xb2   : > { %p493_p13 = por %p492_p4, %p491_p10 }
  0xb3   : > { %p489_p7 = pneg %p488_p6 }
  0xb5   : > { %p494_p8 = pnand %p493_p13, %p489_p7 }
  0xb7   : > { %497 = shalt.err (!%p494_p8)
}
  0xb8   : > { %376 = dma.vmem_to_hbm [thread:$0]  (%p624_p9), %s274_s29, 128, %s271_s4, %s257_s5  }
  0xb9 PF: > { %s285_s26 = sand.u32 1, %s532_s9   ;;  %p722_p11 = scmp.ne.s32.totalorder %s720_s24, 0 }
  0xba   : > { %p723_p12 = scmp.ge.s32.totalorder %s552_s14, 2  ;;  %s286_s27 = scalar_lea.sflag [#allocation4], %s285_s26 }
  0xbc   : > { %p383_p0 = pnand %p723_p12, %p722_p11 }
  0xbe   : > { %p384_p1 = pneg %p383_p0 }
  0xc0   : > { %527 = dma.done.wait (%p384_p1), %s286_s27, 128  }
  0xc1   : > { %529 = vsyncadd (%p384_p1), %s286_s27, 4294967168  ;;  %s18_s14 = sadd.s32 1, %s552_s14   ;;  %s724_s9 = smov %s536_s10 }
  0xc2   : > { %p15_p2 = scmp.ge.s32.totalorder %s18_s14, 4   ;;  %s725_s10 = smov %s540_s11 }
  0xc3   : > { %s726_s11 = smov %s629_s23  ;;  %s727_s12 = smov %s548_s13 }
  0xc4   : > { %s728_s13 = smov %s730_s17  ;;  %17 = sbr.rel (!%p15_p2) target bundleno = 6 (0x6), region = 73 }
  0xc9   :  { %291 = vsyncpa [#allocation3], 1 }
  0xca   :  { %293 = vsyncpa [#allocation3 + $0x1], 1 }
  0xcb   :  { %294 = vsyncpa [#allocation4], 1 }
  0xcc   :  { %296 = vsyncpa [#allocation4 + $0x1], 1 }

</bundles_post_ra>
